<compile_context>
chip_gen: v5e
topology: v5e:2x2
jax: 0.10.0
libtpu: 0.0.40
codegen_flags: <defaults>
</compile_context>

<pallas_src>
import functools

import jax
import jax.numpy as jnp
from jax import lax
from jax.experimental import pallas as pl
from jax.experimental.pallas import tpu as pltpu


def _fln_kernel(x_ref, wb_ref, o_ref, *, eps, hidden):
    # x_ref: (row_tile, H); wb_ref: (2, H) f32 = [weight; bias]
    xf = x_ref[...].astype(jnp.float32)
    inv_h = jnp.float32(1.0 / hidden)
    # Two-pass mean / biased variance over the VMEM-resident tile
    # (avoids E[x^2]-E[x]^2 cancellation; unbiased=False semantics).
    mean = jnp.sum(xf, axis=-1, keepdims=True) * inv_h
    xc = xf - mean
    var = jnp.sum(xc * xc, axis=-1, keepdims=True) * inv_h
    inv = lax.rsqrt(var + jnp.float32(eps))              # EUP slot
    w = wb_ref[0:1, :]
    b = wb_ref[1:2, :]
    o_ref[...] = (xc * inv * w + b).astype(o_ref.dtype)


def _round_up(a, m):
    return ((a + m - 1) // m) * m


def _vmem_capacity_bytes():
    try:
        info = pltpu.get_tpu_info()
        cap = getattr(info, "vmem_capacity_bytes", None)
        if cap:
            return int(cap)
    except Exception:
        pass
    return 64 << 20  # conservative fallback (v7x per-TC VMEM)


def _choose_row_tile(rows, hidden, x_itemsize, budget_bytes):
    # VMEM per tile row: double-buffered input + double-buffered output in the
    # x dtype, plus ~3 live f32 intermediates inside the kernel (xf, xc, result).
    per_row = (4 * x_itemsize + 12) * hidden
    rt = budget_bytes // max(per_row, 1)
    rt = max(16, min(512, int(rt)))            # >512 rows buys <1%, costs VMEM
    rt = (rt // 16) * 16                       # sublane-friendly for f32 & bf16
    rt = min(rt, _round_up(rows, 8))           # don't over-size for tiny inputs
    if rows > 8:
        # Prefer >= 4 grid steps (balanced megacore split on v7x + pipelining);
        # fall back to >= 2 steps for very small inputs.
        target = _round_up(max(1, -(-rows // 4)), 8)
        if -(-rows // target) < 2:
            target = max(8, ((rows - 1) // 8) * 8)
        rt = min(rt, target)
    return max(rt, 8)


def fractured_layer_norm(x, weight1, bias1, weight2, bias2, *, eps=1e-5,
                         row_tile=None):
    """x: (batch, seq, hidden). Returns same shape/dtype as x."""
    assert x.ndim == 3, "fracturing only supports 3d input (B, S, H)"
    B, S, H = x.shape
    rows = B * S
    itemsize = jnp.dtype(x.dtype).itemsize

    # Fused affine params (equivalent to the torch slice/concat path), kept in
    # f32 so mixed weight dtypes are never accidentally downcast.
    wb = jnp.stack([jnp.concatenate([weight1, weight2]),
                    jnp.concatenate([bias1, bias2])]).astype(jnp.float32)  # (2, H)

    cap = _vmem_capacity_bytes()
    vmem_limit = min(cap // 2, 64 << 20)       # <=32 MiB on v7x, 64 MiB on v5e/v6e
    if row_tile is None:
        row_tile = _choose_row_tile(rows, H, itemsize, (vmem_limit * 3) // 4)

    grid = (pl.cdiv(rows, row_tile),)          # ragged last block handled by Pallas
    x2 = x.reshape(rows, H)

    cost = pl.CostEstimate(
        flops=9 * rows * H,
        transcendentals=rows,
        bytes_accessed=2 * rows * H * itemsize + int(wb.size) * 4,
    )

    out = pl.pallas_call(
        functools.partial(_fln_kernel, eps=eps, hidden=H),
        out_shape=jax.ShapeDtypeStruct((rows, H), x.dtype),
        grid_spec=pltpu.PrefetchScalarGridSpec(
            num_scalar_prefetch=0,
            grid=grid,
            in_specs=[
                pl.BlockSpec((row_tile, H), lambda i: (i, 0)),
                pl.BlockSpec((2, H), lambda i: (0, 0)),   # constant block: no re-DMA
            ],
            out_specs=pl.BlockSpec((row_tile, H), lambda i: (i, 0)),
        ),
        compiler_params=pltpu.CompilerParams(
            dimension_semantics=("parallel",),
            vmem_limit_bytes=vmem_limit,
        ),
        cost_estimate=cost,
    )(x2, wb)

    return out.reshape(B, S, H)


def _reference(x, weight1, bias1, weight2, bias2, eps=1e-5, fracture_amount=None):
    """Pure-JAX transcription of FracturedLayerNorm.forward (fracture=True)."""
    xf = x.astype(jnp.float32)
    mean = jnp.mean(xf, axis=-1, keepdims=True)
    var = jnp.mean((xf - mean) ** 2, axis=-1, keepdims=True)
    xn = (xf - mean) / jnp.sqrt(var + eps)
    fa = fracture_amount
    f1 = xn[:, :, :fa] * weight1 + bias1
    f2 = xn[:, :, fa:] * weight2 + bias2
    return jnp.concatenate([f1, f2], axis=-1).astype(x.dtype)


if __name__ == "__main__":
    # Small shapes consistent with the module's forward (3d, fractured affine).
    # NOTE: H=32 (< 128 lanes) is test-only; production falcon H=4544 keeps the
    # full hidden dim on the lane axis and hits the large-tile code path.
    batch, seq, hidden = 2, 8, 32
    fracture_amount = 12          # weight1/bias1: (12,), weight2/bias2: (20,)
    eps = 1e-5

    key = jax.random.PRNGKey(0)
    kx, = jax.random.split(key, 1)
    x = jax.random.normal(kx, (batch, seq, hidden), dtype=jnp.float32)

    # Deterministic, non-trivial affine params (module init would be ones/zeros).
    weight1 = 1.0 + 0.01 * jnp.arange(fracture_amount, dtype=jnp.float32)
    bias1 = 0.05 * jnp.arange(fracture_amount, dtype=jnp.float32)
    weight2 = 1.0 - 0.01 * jnp.arange(hidden - fracture_amount, dtype=jnp.float32)
    bias2 = -0.05 * jnp.arange(hidden - fracture_amount, dtype=jnp.float32)

    out = fractured_layer_norm(x, weight1, bias1, weight2, bias2, eps=eps)
    out = jax.block_until_ready(out)

    ref = _reference(x, weight1, bias1, weight2, bias2, eps=eps,
                     fracture_amount=fracture_amount)
    assert out.shape == (batch, seq, hidden)
    assert out.dtype == x.dtype
    assert jnp.max(jnp.abs(out - ref)) < 2e-5, "mismatch vs reference"

    print("KERNEL_OK")
</pallas_src>

<mosaic_0001>
module attributes {stable_mosaic.version = 11 : i64} {
  func.func @_fln_kernel(%arg0: i32, %arg1: memref<8x32xf32, #tpu.memory_space<vmem>>, %arg2: memref<2x32xf32, #tpu.memory_space<vmem>>, %arg3: memref<8x32xf32, #tpu.memory_space<vmem>>) attributes {dimension_semantics = [#tpu.dimension_semantics<parallel>], iteration_bounds = array<i64: 2>, scalar_prefetch = 0 : i64, scratch_operands = 0 : i64, tpu.core_type = #tpu.core_type<tc>, window_params = [{transform_indices = @transform_0, window_bounds = array<i64: 8, 32>}, {pipeline_mode = #tpu.pipeline_mode<synchronous>, transform_indices = @transform_1, window_bounds = array<i64: 2, 32>}, {transform_indices = @transform_2, window_bounds = array<i64: 8, 32>}]} {
    %c0 = arith.constant 0 : index
    %c0_0 = arith.constant 0 : index
    %0 = vector.load %arg1[%c0, %c0_0] : memref<8x32xf32, #tpu.memory_space<vmem>>, vector<8x32xf32>
    %cst = arith.constant dense<0.000000e+00> : vector<8xf32>
    %1 = vector.multi_reduction <add>, %0, %cst [1] : vector<8x32xf32> to vector<8xf32>
    %2 = vector.shape_cast %1 : vector<8xf32> to vector<8x1xf32>
    %cst_1 = arith.constant 3.125000e-02 : f32
    %3 = vector.broadcast %cst_1 : f32 to vector<8x1xf32>
    %4 = arith.mulf %2, %3 : vector<8x1xf32>
    %5 = vector.broadcast %4 : vector<8x1xf32> to vector<8x32xf32>
    %6 = arith.subf %0, %5 : vector<8x32xf32>
    %7 = arith.mulf %6, %6 : vector<8x32xf32>
    %cst_2 = arith.constant dense<0.000000e+00> : vector<8xf32>
    %8 = vector.multi_reduction <add>, %7, %cst_2 [1] : vector<8x32xf32> to vector<8xf32>
    %9 = vector.shape_cast %8 : vector<8xf32> to vector<8x1xf32>
    %cst_3 = arith.constant 3.125000e-02 : f32
    %10 = vector.broadcast %cst_3 : f32 to vector<8x1xf32>
    %11 = arith.mulf %9, %10 : vector<8x1xf32>
    %cst_4 = arith.constant 9.99999974E-6 : f32
    %12 = vector.broadcast %cst_4 : f32 to vector<8x1xf32>
    %13 = arith.addf %11, %12 : vector<8x1xf32>
    %14 = math.rsqrt %13 : vector<8x1xf32>
    %c0_5 = arith.constant 0 : index
    %c0_6 = arith.constant 0 : index
    %15 = vector.load %arg2[%c0_5, %c0_6] : memref<2x32xf32, #tpu.memory_space<vmem>>, vector<1x32xf32>
    %c1 = arith.constant 1 : index
    %c0_7 = arith.constant 0 : index
    %16 = vector.load %arg2[%c1, %c0_7] : memref<2x32xf32, #tpu.memory_space<vmem>>, vector<1x32xf32>
    %17 = vector.broadcast %14 : vector<8x1xf32> to vector<8x32xf32>
    %18 = arith.mulf %6, %17 : vector<8x32xf32>
    %19 = vector.broadcast %15 : vector<1x32xf32> to vector<8x32xf32>
    %20 = arith.mulf %18, %19 : vector<8x32xf32>
    %21 = vector.broadcast %16 : vector<1x32xf32> to vector<8x32xf32>
    %22 = arith.addf %20, %21 : vector<8x32xf32>
    %c0_8 = arith.constant 0 : index
    %c0_9 = arith.constant 0 : index
    %23 = vector.load %arg3[%c0_8, %c0_9] : memref<8x32xf32, #tpu.memory_space<vmem>>, vector<8x32xf32>
    tpu.vector_store %arg3[%c0_8, %c0_9], %22 {strides = array<i32>} : memref<8x32xf32, #tpu.memory_space<vmem>>, vector<8x32xf32>,
    return
  }
  func.func @transform_0(%arg0: i32) -> (i32, i32) {
    %c0_i32 = arith.constant 0 : i32
    %c0_i32_0 = arith.constant 0 : i32
    return %arg0, %c0_i32 : i32, i32
  }
  func.func @transform_1(%arg0: i32) -> (i32, i32) {
    %c0_i32 = arith.constant 0 : i32
    %c0_i32_0 = arith.constant 0 : i32
    %c0_i32_1 = arith.constant 0 : i32
    return %c0_i32, %c0_i32_0 : i32, i32
  }
  func.func @transform_2(%arg0: i32) -> (i32, i32) {
    %c0_i32 = arith.constant 0 : i32
    %c0_i32_0 = arith.constant 0 : i32
    return %arg0, %c0_i32 : i32, i32
  }
}

</mosaic_0001>

<bundles_post_ra>
// kernel: tpu_custom_call.1
= control target key start
LH: loop header
LB: loop body
LE: loop exit
PB: predicated region body
PF: predicated region fallthrough
CT: control target
= control target key end

     0   :  { %7 = vsyncpa [#allocation3], 0  ;;  %s671_s0 = inlined_call_operand.hbm [shape: f32[16,32], index: 0, kind: input, shape index: {}]   ;;  %s672_s1 = inlined_call_operand.hbm [shape: f32[2,32], index: 1, kind: input, shape index: {}]   ;;  %s673_s2 = inlined_call_operand.hbm [shape: f32[16,32], index: 2, kind: output, shape index: {}]  }
   0x1   :  { %9 = vsyncpa [#allocation3 + $0x1], 0 }
   0x2   :  { %10 = vsyncpa [#allocation6], 0 }
   0x3   :  { %11 = vsyncpa [#allocation4], 0 }
   0x4   :  { %13 = vsyncpa [#allocation4 + $0x1], 0  ;;  %s526_s9 = smov 0   ;;  %s528_s10 = smov 0  }
   0x5   :  { %s530_s11 = smov 0   ;;  %s532_s12 = smov 0  }
   0x6 LB: > { %s547_s13 = sadd.s32 4294967295, %s508_s12   ;;  %s303_s14 = sadd.s32 4294967294, %s508_s12   ;;  %s508_s12 = sphi %s532_s12, %s683_s12   ;;  %s504_s11 = sphi %s530_s11, %s682_s11   ;;  %s500_s10 = sphi %s528_s10, %s681_s10   ;;  %s496_s9 = sphi %s526_s9, %s680_s9  }
   0x7   : > { %p39_p0 = scmp.ne.s32.totalorder %s500_s10, %s496_s9  ;;  %p40_p1 = scmp.eq.s32.totalorder %s547_s13, 0 }
   0x8   : > { %p84_p2 = scmp.eq.s32.totalorder %s547_s13, 1  ;;  %p90_p3 = scmp.eq.s32.totalorder %s303_s14, 1 }
   0x9   : > { %p556_p4 = por %p40_p1, %p39_p0  ;;  %p304_p5 = scmp.ge.s32.totalorder %s508_s12, 1 }
   0xa   : > { %p561_p6 = por %p90_p3, %p39_p0  ;;  %p97_p7 = scmp.lt.s32.totalorder %s508_s12, 3 }
   0xb   : > { %s109_s19 = sshll.u32 %s672_s1, 4  ;;  %s510_s21 = smov [#allocation5]   ;;  %s110_s19 = int_to_ptr.hbm [resolvable:$true] %s109_s19 }
   0xc   : > { %p569_p8 = pnand %p304_p5, %p97_p7  ;;  %s111_s22 = sshll.u32 %s510_s21, 4  ;;  %s112_s22 = int_to_ptr.vmem [resolvable:$true] %s111_s22 }
   0xd   : > { %s579_s23 = sadd.s32 1, %s508_s12   ;;  %s26_s24 = sadd.s32 1, %s504_s11 }
   0xe   : > { %p325_p10 = pneg %p569_p8  ;;  %s23_s25 = ssub.s32 %s508_s12, %s579_s23 }
   0xf   : > { %p24_p12 = scmp.eq.s32.totalorder %s23_s25, 0  ;;  %p33_p13 = scmp.ne.s32.totalorder %s504_s11, %s500_s10 }
  0x10   : > { %p326_p11 = pnand %p325_p10, %p40_p1  ;;  %p34_p0 = scmp.eq.s32.totalorder %s508_s12, 0 }
  0x11   : > { %s588_s26 = scalar_select %p24_p12, %s504_s11, %s26_s24  }
  0x12   : > { %328 = dma.hbm_to_vmem [thread:$0]  (!%p326_p11), %s110_s19, 32, %s112_s22, [#allocation6]  }
  0x13   : > { %p592_p3 = por %p84_p2, %p33_p13  ;;  %p338_p5 = scmp.lt.s32.totalorder %s508_s12, 2 }
  0x14   : > { %s122_s28 = sand.u32 1, %s504_s11   ;;  %s308_s29 = sshll.u32 %s508_s12, 3 }
  0x15   : > { %p35_p7 = por %p34_p0, %p33_p13  ;;  %s307_s30 = sshll.u32 %s122_s28, 3 }
  0x16   : > { %s130_s5 = scalar_lea.hbm %s671_s0, %s308_s29  ;;  %s126_s7 = scalar_lea.vmem [#allocation2], %s307_s30 }
  0x17   : > { %s132_s6 = sshll.u32 %s130_s5, 4  ;;  %s134_s8 = sshll.u32 %s126_s7, 4  ;;  %s133_s6 = int_to_ptr.hbm [resolvable:$true] %s132_s6  ;;  %s135_s8 = int_to_ptr.vmem [resolvable:$true] %s134_s8 }
  0x18   : > { %p602_p10 = pnand %p338_p5, %p35_p7  ;;  %s123_s17 = scalar_lea.sflag [#allocation3], %s122_s28 }
  0x19   : > { %s408_s18 = sshra.s32 %s133_s6, 4  ;;  %s415_s24 = scalar_lea.hbm %s671_s0, 16  ;;  %s409_s18 = int_to_ptr.hbm [resolvable:$true] %s408_s18 }
  0x1a   : > { %s410_s19 = scalar_lea.hbm %s409_s18, 8  ;;  %p412_p11 = pneg %p602_p10 }
  0x1b   : > { %p411_p2 = scmp.ne.s32.totalorder %s409_s18, %s410_s19  ;;  %p416_p0 = scmp.lt.s32.totalorder %s409_s18, %s671_s0 }
  0x1c   : > { %p417_p5 = scmp.lt.s32.totalorder %s415_s24, %s410_s19 }
  0x1d   : > { %p413_p12 = pnand %p412_p11, %p411_p2 }
  0x1e   : > { %p418_p7 = por %p417_p5, %p416_p0 }
  0x1f   : > { %p414_p13 = pneg %p413_p12 }
  0x21   : > { %p419_p9 = pnand %p418_p7, %p414_p13 }
  0x23   : > { %422 = shalt.err (!%p419_p9)
}
  0x24   : > { %332 = dma.hbm_to_vmem [thread:$0]  (!%p602_p10), %s133_s6, 128, %s135_s8, %s123_s17  }
  0x25   : > { %143 = sbr.rel (%p569_p8) target bundleno = 317 (0x13d), region = 28  ;;  %s619_s28 = sand.u32 (!%p569_p8), 1, %s500_s10  }
  0x26   : > { %s310_s30 = sshll.u32 (!%p569_p8), %s619_s28, 3  ;;  %s146_s3 = scalar_lea.sflag (!%p569_p8), [#allocation3], %s619_s28 }
  0x27   : > { %s149_s4 = scalar_lea.vmem (!%p569_p8), [#allocation2], %s310_s30 }
  0x2a   : > { %483 = dma.done.wait (%p556_p4), %s146_s3, 128  }
  0x2b   : > { %485 = vsyncadd (%p556_p4), %s146_s3, 4294967168 }
  0x2c   : > { %487 = dma.done.wait (%p40_p1), [#allocation6], 32  }
  0x2d   : > { %489 = vsyncadd (%p40_p1), [#allocation6], 4294967264  ;;  %vm177_vm0 = vcmask 261120   ;;  %v176_v0 = vld [vmem:[%s149_s4] sm:$0xff]  ;;  %s314_s15 = sshll.u32 %s547_s13, 3  ;;  %s175_s7 = scalar_lea.vmem [#allocation7], %s310_s30 }
  0x2e   : > { %v178_v1 = vsel %vm177_vm0, %v176_v0, 0.0  ;;  %v374_v16 = vld [vmem:[#allocation5] ss:$0 sm:$0xff]  ;;  %s218_s6 = scalar_lea.hbm %s673_s2, %s314_s15  ;;  %v375_v18 = vld [vmem:[#allocation5 + $0x1] ss:$0 sm:$0xff]  ;;  %s220_s8 = sshll.u32 %s175_s7, 4  ;;  %s221_s8 = int_to_ptr.vmem [resolvable:$true] %s220_s8 }
  0x2f   : > { %179 = vadd.xlane.f32.xlu0 %v178_v1  ;;  %s222_s14 = sshll.u32 %s218_s6, 4  ;;  %s208_s13 = scalar_lea.sflag [#allocation4], %s619_s28  ;;  %s223_s14 = int_to_ptr.hbm [resolvable:$true] %s222_s14 }
  0x30   : > { %s452_s17 = sshra.s32 %s223_s14, 4  ;;  %s458_s22 = scalar_lea.hbm %s673_s2, 16  ;;  %s453_s17 = int_to_ptr.hbm [resolvable:$true] %s452_s17 }
  0x31   : > { %s454_s18 = scalar_lea.hbm %s453_s17, 8  ;;  %p459_p9 = scmp.lt.s32.totalorder %s453_s17, %s673_s2 }
  0x32   : > { %p455_p1 = scmp.ne.s32.totalorder %s453_s17, %s454_s18  ;;  %p460_p10 = scmp.lt.s32.totalorder %s458_s22, %s454_s18 }
  0x34   : > { %p456_p4 = pnand %p455_p1, %p592_p3  ;;  %p461_p2 = por %p460_p10, %p459_p9 }
  0x36   : > { %p457_p8 = pneg %p456_p4 }
  0x38   : > { %p462_p11 = pnand %p461_p2, %p457_p8 }
  0xa2   : > { %v180_v2 = vpop.xlane.xlu0 %179 }
  0xa3   : > { %v181_v3 = vmul.f32 0.03125, %v180_v2 }
  0xa5   : > { %v182_v4 = vsub.f32 %v176_v0, %v181_v3 }
  0xa7   : > { %v183_v5 = vmul.f32 %v182_v4, %v182_v4 }
  0xa9   : > { %v184_v6 = vsel %vm177_vm0, %v183_v5, 0.0 }
  0xaa   : > { %185 = vadd.xlane.f32.xlu0 %v184_v6 }
 0x11d   : > { %v186_v7 = vpop.xlane.xlu0 %185 }
 0x11e   : > { %v187_v8 = vmul.f32 0.03125, %v186_v7 }
 0x120   : > { %v188_v9 = vadd.f32 1e-05, %v187_v8 }
 0x122   : > { %376 = vrsqrt.f32 %v188_v9  ;;  %vm195_vm2 = vweird.f32 %v188_v9 }
 0x128   : > { %v377_v10 = vpop.eup %376 }
 0x129   : > { %v190_v11 = vmul.f32 %v377_v10, %v188_v9  ;;  %vm196_vm1 = vweird.f32 %v377_v10 }
 0x12a   : > { %vm197_vm3 = vmor %vm195_vm2, %vm196_vm1 }
 0x12b   : > { %v191_v12 = vmul.f32 %v377_v10, %v190_v11 }
 0x12d   : > { %v192_v13 = vmul.f32 0.5, %v191_v12 }
 0x12f   : > { %v193_v14 = vsub.f32 1.5, %v192_v13 }
 0x131   : > { %v194_v15 = vmul.f32 %v377_v10, %v193_v14 }
 0x133   : > { %v198_v17 = vsel %vm197_vm3, %v377_v10, %v194_v15 }
 0x134   : > { %v201_v19 = vmul.f32 %v198_v17, %v182_v4 }
 0x136   : > { %v203_v20 = vmul.f32 %v374_v16, %v201_v19 }
 0x138   : > { %v205_v21 = vadd.f32 %v375_v18, %v203_v20 }
 0x13a   : > { %206 = vst.msk [vmem:[%s175_s7] sm:$0xff] %vm177_vm0, %v205_v21 }
 0x13b   : > { %465 = shalt.err (!%p462_p11)
}
 0x13c   : > { %323 = dma.vmem_to_hbm [thread:$0]  (%p592_p3), %s221_s8, 128, %s223_s14, %s208_s13  }
 0x13d PF: > { %s234_s29 = sand.u32 1, %s496_s9   ;;  %p679_p12 = scmp.ge.s32.totalorder %s508_s12, 2 }
 0x13e   : > { %s235_s28 = scalar_lea.sflag [#allocation4], %s234_s29 }
 0x13f   : > { %p334_p13 = pnand %p679_p12, %p561_p6 }
 0x141   : > { %p335_p0 = pneg %p334_p13 }
 0x143   : > { %491 = dma.done.wait (%p335_p0), %s235_s28, 128  }
 0x144   : > { %493 = vsyncadd (%p335_p0), %s235_s28, 4294967168  ;;  %p16_p5 = scmp.ge.s32.totalorder %s579_s23, 4   ;;  %s680_s9 = smov %s500_s10 }
 0x145   : > { %s681_s10 = smov %s504_s11  ;;  %s682_s11 = smov %s588_s26 }
 0x146   : > { %s683_s12 = smov %s579_s23  ;;  %18 = sbr.rel (!%p16_p5) target bundleno = 6 (0x6), region = 77 }
 0x14b   :  { %241 = vsyncpa [#allocation3], 1 }
 0x14c   :  { %243 = vsyncpa [#allocation3 + $0x1], 1 }
 0x14d   :  { %244 = vsyncpa [#allocation6], 1 }
 0x14e   :  { %245 = vsyncpa [#allocation4], 1 }
 0x14f   :  { %247 = vsyncpa [#allocation4 + $0x1], 1 }

</bundles_post_ra>
